<compile_context>
chip_gen: v6e
topology: v6e:2x2x1
jax: 0.10.0
libtpu: 0.0.40
codegen_flags: <defaults>
</compile_context>

<pallas_src>
import functools
import math

import jax
import jax.numpy as jnp
from jax.experimental import pallas as pl
from jax.experimental.pallas import tpu as pltpu


def attention_kernel(xq_ref, xkv_ref, wq_ref, bq_ref, wkv_ref, bkv_ref,
                     wo_ref, bo_ref, out_ref, wts_ref, k_scratch, v_scratch,
                     *, num_heads, head_dim, mm_dtype):
    """One grid step == (one batch element, one query tile).

    xq_ref    : (1, TQ, H)      query rows of the input for this tile
    xkv_ref   : (1, S,  H)      full sequence (needed for keys / values)
    wq_ref    : (H, H)          query projection weight ([in, out] layout)
    wkv_ref   : (H, 2H)         fused key|value projection weight
    wo_ref    : (H, H)          output projection weight
    b*_ref    : (1, H)/(1, 2H)  biases (kept in f32)
    out_ref   : (1, TQ, H)      attention output tile
    wts_ref   : (1, nh, TQ, S)  softmax attention probabilities
    k_scratch : (nh, S, d)      head-split keys, persists across query tiles
    v_scratch : (nh, S, d)      head-split values, persists across query tiles
    """
    H = num_heads * head_dim
    d = head_dim
    scale = 1.0 / math.sqrt(d)
    qi = pl.program_id(1)

    # K|V projection + head split: once per batch element, cached in VMEM scratch.
    @pl.when(qi == 0)
    def _():
        xkv = xkv_ref[0].astype(mm_dtype)                                # (S, H)
        kv = (jnp.dot(xkv, wkv_ref[...], preferred_element_type=jnp.float32)
              + bkv_ref[...])                                            # (S, 2H) f32
        for h in range(num_heads):
            k_scratch[h] = kv[:, h * d:(h + 1) * d].astype(mm_dtype)
            v_scratch[h] = kv[:, H + h * d:H + (h + 1) * d].astype(mm_dtype)

    # Q projection for this query tile only (MXU, f32 accumulation, scale folded in).
    xq = xq_ref[0].astype(mm_dtype)                                      # (TQ, H)
    q = (jnp.dot(xq, wq_ref[...], preferred_element_type=jnp.float32)
         + bq_ref[...]) * scale                                          # (TQ, H)  f32
    q_h = jnp.stack([q[:, h * d:(h + 1) * d] for h in range(num_heads)],
                    axis=0).astype(mm_dtype)                             # (nh, TQ, d)

    k_h = k_scratch[...]                                                 # (nh, S, d)
    v_h = v_scratch[...]                                                 # (nh, S, d)

    # Batched scores for all heads, contracting d-vs-d (no explicit transpose).
    s = jax.lax.dot_general(
        q_h, k_h,
        dimension_numbers=(((2,), (2,)), ((0,), (0,))),
        preferred_element_type=jnp.float32)                              # (nh, TQ, S)

    # Numerically-stable softmax over the key axis, all heads at once.
    m = jnp.max(s, axis=-1, keepdims=True)
    e = jnp.exp(s - m)
    denom = jnp.sum(e, axis=-1, keepdims=True)
    p = e * pl.reciprocal(denom, approx=True)

    # Single lane-dense store of the attention probabilities.
    wts_ref[0] = p.astype(wts_ref.dtype)                                 # (nh, TQ, S)

    # Batched context: (nh, TQ, d)
    ctx = jax.lax.dot_general(
        p.astype(mm_dtype), v_h,
        dimension_numbers=(((2,), (1,)), ((0,), (0,))),
        preferred_element_type=jnp.float32)

    # Merge heads back to (TQ, H), then one wide output-projection matmul.
    ctx_flat = jnp.concatenate([ctx[h] for h in range(num_heads)], axis=-1)
    out = (jnp.dot(ctx_flat.astype(mm_dtype), wo_ref[...],
                   preferred_element_type=jnp.float32) + bo_ref[...])
    out_ref[0] = out.astype(out_ref.dtype)


def _cost_estimate(B, S, H, num_heads, mm_itemsize):
    flops = 2 * B * (S * H * H          # Q projection
                     + S * 2 * H * H    # fused K|V projection (once per batch)
                     + S * S * H        # Q @ K^T  (all heads)
                     + S * S * H        # P @ V    (all heads)
                     + S * H * H)       # output projection
    transcendentals = B * num_heads * S * S                  # exp in softmax
    bytes_accessed = (2 * 4 * B * S * H                      # x (query tiles + K/V read)
                      + mm_itemsize * 4 * H * H              # projection weights
                      + 4 * B * S * H                        # output
                      + 4 * B * num_heads * S * S)           # attention probabilities
    return pl.CostEstimate(flops=int(flops),
                           transcendentals=int(transcendentals),
                           bytes_accessed=int(bytes_accessed))


def attention_pallas(x, params, num_heads, *, q_tile=None, matmul_dtype=None):
    """x: (B, S, H).  params: dict of wq,bq,wk,bk,wv,bv,wo,bo ([in,out] weight layout).

    q_tile       : query-tile size (grid axis); default = S (single tile). Must divide S
                   and be a multiple of 8 when smaller than S.
    matmul_dtype : dtype for matmul operands (e.g. jnp.bfloat16 on v6e/v7x); accumulation
                   is always f32. Default: x.dtype.
    """
    B, S, H = x.shape
    assert H % num_heads == 0
    head_dim = H // num_heads

    if q_tile is None:
        q_tile = S
    assert S % q_tile == 0
    assert q_tile == S or q_tile % 8 == 0, "query tile must be sublane-aligned"
    n_q = S // q_tile

    mm_dtype = jnp.dtype(matmul_dtype) if matmul_dtype is not None else jnp.dtype(x.dtype)

    # Fuse K and V projection weights/biases into single wide operands (one MXU matmul,
    # one weight DMA); optionally cast weights to the matmul dtype once on the host side.
    wq = params["wq"].astype(mm_dtype)
    wkv = jnp.concatenate([params["wk"], params["wv"]], axis=1).astype(mm_dtype)
    wo = params["wo"].astype(mm_dtype)
    bq = params["bq"].astype(jnp.float32)
    bkv = jnp.concatenate([params["bk"], params["bv"]], axis=1).astype(jnp.float32)
    bo = params["bo"].astype(jnp.float32)

    kernel = functools.partial(attention_kernel, num_heads=num_heads,
                               head_dim=head_dim, mm_dtype=mm_dtype)

    xq_spec = pl.BlockSpec((1, q_tile, H), lambda b, qi: (b, qi, 0))
    xkv_spec = pl.BlockSpec((1, S, H), lambda b, qi: (b, 0, 0))
    wq_spec = pl.BlockSpec((H, H), lambda b, qi: (0, 0))
    bq_spec = pl.BlockSpec((1, H), lambda b, qi: (0, 0))
    wkv_spec = pl.BlockSpec((H, 2 * H), lambda b, qi: (0, 0))
    bkv_spec = pl.BlockSpec((1, 2 * H), lambda b, qi: (0, 0))
    wo_spec = pl.BlockSpec((H, H), lambda b, qi: (0, 0))
    bo_spec = pl.BlockSpec((1, H), lambda b, qi: (0, 0))

    out_shapes = (
        jax.ShapeDtypeStruct((B, S, H), x.dtype),                  # attention_output
        jax.ShapeDtypeStruct((B, num_heads, S, S), jnp.float32),   # attention weights
    )
    out_specs = [
        pl.BlockSpec((1, q_tile, H), lambda b, qi: (b, qi, 0)),
        pl.BlockSpec((1, num_heads, q_tile, S), lambda b, qi: (b, 0, qi, 0)),
    ]

    return pl.pallas_call(
        kernel,
        out_shape=out_shapes,
        grid=(B, n_q),
        in_specs=[xq_spec, xkv_spec,
                  wq_spec, bq_spec,
                  wkv_spec, bkv_spec,
                  wo_spec, bo_spec],
        out_specs=out_specs,
        scratch_shapes=[pltpu.VMEM((num_heads, S, head_dim), mm_dtype),   # keys
                        pltpu.VMEM((num_heads, S, head_dim), mm_dtype)],  # values
        compiler_params=pltpu.CompilerParams(
            dimension_semantics=("parallel", "arbitrary")),
        cost_estimate=_cost_estimate(B, S, H, num_heads, mm_dtype.itemsize),
    )(x, x, wq, bq, wkv, bkv, wo, bo)


def attention_reference(x, params, num_heads):
    """Pure-JAX reference mirroring the PyTorch forward (dropout = identity)."""
    B, S, H = x.shape
    d = H // num_heads
    q = x @ params["wq"] + params["bq"][0]
    k = x @ params["wk"] + params["bk"][0]
    v = x @ params["wv"] + params["bv"][0]

    def split(t):  # (B,S,H) -> (B,nh,S,d)
        return t.reshape(B, S, num_heads, d).transpose(0, 2, 1, 3)

    q, k, v = split(q), split(k), split(v)
    scores = jnp.einsum("bhqd,bhkd->bhqk", q, k) / math.sqrt(d)
    probs = jax.nn.softmax(scores, axis=-1)
    ctx = jnp.einsum("bhqk,bhkd->bhqd", probs, v)
    ctx = ctx.transpose(0, 2, 1, 3).reshape(B, S, H)
    out = ctx @ params["wo"] + params["bo"][0]
    return out, probs


if __name__ == "__main__":
    # Small config consistent with the module: hidden_size=32, num_heads=4, seq=8, batch=2.
    B, S, H, num_heads = 2, 8, 32, 4

    key = jax.random.PRNGKey(0)
    keys = jax.random.split(key, 9)
    init = 0.05

    # PyTorch Linear computes y = x @ W.T + b with W of shape (out, in).  We initialize
    # weights directly in the (in, out) layout used by the kernel (== pre-transposed W).
    params = {
        "wq": init * jax.random.normal(keys[0], (H, H), jnp.float32),
        "bq": init * jax.random.normal(keys[1], (1, H), jnp.float32),
        "wk": init * jax.random.normal(keys[2], (H, H), jnp.float32),
        "bk": init * jax.random.normal(keys[3], (1, H), jnp.float32),
        "wv": init * jax.random.normal(keys[4], (H, H), jnp.float32),
        "bv": init * jax.random.normal(keys[5], (1, H), jnp.float32),
        "wo": init * jax.random.normal(keys[6], (H, H), jnp.float32),
        "bo": init * jax.random.normal(keys[7], (1, H), jnp.float32),
    }
    x = jax.random.normal(keys[8], (B, S, H), jnp.float32)

    ref_out, ref_w = attention_reference(x, params, num_heads)

    # f32 operands (default path), single query tile per batch element.
    out, w = attention_pallas(x, params, num_heads)
    out = jax.block_until_ready(out)
    w = jax.block_until_ready(w)
    assert out.shape == (B, S, H)
    assert w.shape == (B, num_heads, S, S)
    assert jnp.allclose(out, ref_out, atol=2e-3, rtol=1e-2), \
        float(jnp.max(jnp.abs(out - ref_out)))
    assert jnp.allclose(w, ref_w, atol=2e-3, rtol=1e-2), \
        float(jnp.max(jnp.abs(w - ref_w)))

    # bf16 matmul operands, f32 accumulation — the fast path on v6e / v7x MXUs.
    out_bf, w_bf = attention_pallas(x, params, num_heads, matmul_dtype=jnp.bfloat16)
    out_bf = jax.block_until_ready(out_bf)
    w_bf = jax.block_until_ready(w_bf)
    assert jnp.allclose(out_bf, ref_out, atol=3e-2, rtol=5e-2)
    assert jnp.allclose(w_bf, ref_w, atol=3e-2, rtol=5e-2)

    print("KERNEL_OK")
</pallas_src>

<mosaic_0001>
module attributes {stable_mosaic.version = 11 : i64} {
  func.func @attention_kernel(%arg0: i32, %arg1: i32, %arg2: memref<1x8x32xf32, #tpu.memory_space<vmem>>, %arg3: memref<1x8x32xf32, #tpu.memory_space<vmem>>, %arg4: memref<32x32xf32, #tpu.memory_space<vmem>>, %arg5: memref<1x32xf32, #tpu.memory_space<vmem>>, %arg6: memref<32x64xf32, #tpu.memory_space<vmem>>, %arg7: memref<1x64xf32, #tpu.memory_space<vmem>>, %arg8: memref<32x32xf32, #tpu.memory_space<vmem>>, %arg9: memref<1x32xf32, #tpu.memory_space<vmem>>, %arg10: memref<1x8x32xf32, #tpu.memory_space<vmem>>, %arg11: memref<1x4x8x8xf32, #tpu.memory_space<vmem>>, %arg12: memref<4x8x8xf32, #tpu.memory_space<vmem>>, %arg13: memref<4x8x8xf32, #tpu.memory_space<vmem>>) attributes {dimension_semantics = [#tpu.dimension_semantics<parallel>, #tpu.dimension_semantics<arbitrary>], iteration_bounds = array<i64: 2, 1>, scalar_prefetch = 0 : i64, scratch_operands = 2 : i64, tpu.core_type = #tpu.core_type<tc>, window_params = [{transform_indices = @transform_0, window_bounds = array<i64: 1, 8, 32>}, {transform_indices = @transform_1, window_bounds = array<i64: 1, 8, 32>}, {pipeline_mode = #tpu.pipeline_mode<synchronous>, transform_indices = @transform_2, window_bounds = array<i64: 32, 32>}, {pipeline_mode = #tpu.pipeline_mode<synchronous>, transform_indices = @transform_3, window_bounds = array<i64: 1, 32>}, {pipeline_mode = #tpu.pipeline_mode<synchronous>, transform_indices = @transform_4, window_bounds = array<i64: 32, 64>}, {pipeline_mode = #tpu.pipeline_mode<synchronous>, transform_indices = @transform_5, window_bounds = array<i64: 1, 64>}, {pipeline_mode = #tpu.pipeline_mode<synchronous>, transform_indices = @transform_6, window_bounds = array<i64: 32, 32>}, {pipeline_mode = #tpu.pipeline_mode<synchronous>, transform_indices = @transform_7, window_bounds = array<i64: 1, 32>}, {transform_indices = @transform_8, window_bounds = array<i64: 1, 8, 32>}, {transform_indices = @transform_9, window_bounds = array<i64: 1, 4, 8, 8>}]} {
    %c0_i32 = arith.constant 0 : i32
    %0 = arith.cmpi eq, %arg1, %c0_i32 : i32
    %1 = arith.extui %0 : i1 to i32
    %c0_i32_0 = arith.constant 0 : i32
    %2 = arith.cmpi ne, %1, %c0_i32_0 : i32
    scf.if %2 {
      %c0_30 = arith.constant 0 : index
      %c0_31 = arith.constant 0 : index
      %c0_32 = arith.constant 0 : index
      %55 = vector.load %arg3[%c0_30, %c0_31, %c0_32] : memref<1x8x32xf32, #tpu.memory_space<vmem>>, vector<1x8x32xf32>
      %56 = vector.shape_cast %55 : vector<1x8x32xf32> to vector<8x32xf32>
      %c0_33 = arith.constant 0 : index
      %c0_34 = arith.constant 0 : index
      %57 = vector.load %arg6[%c0_33, %c0_34] : memref<32x64xf32, #tpu.memory_space<vmem>>, vector<32x64xf32>
      %cst_35 = arith.constant dense<0.000000e+00> : vector<8x64xf32>
      %58 = tpu.matmul %56, %57, %cst_35 {dimension_numbers = #tpu.dot_dimension_numbers<[1], [0], [0], [1], [0, 0, 1, 1], [], []>} : vector<8x32xf32>, vector<32x64xf32>, vector<8x64xf32> -> vector<8x64xf32>
      %c0_36 = arith.constant 0 : index
      %c0_37 = arith.constant 0 : index
      %59 = vector.load %arg7[%c0_36, %c0_37] : memref<1x64xf32, #tpu.memory_space<vmem>>, vector<1x64xf32>
      %60 = vector.broadcast %59 : vector<1x64xf32> to vector<8x64xf32>
      %61 = arith.addf %58, %60 : vector<8x64xf32>
      %62 = vector.extract_strided_slice %61 {offsets = [0, 0], sizes = [8, 8], strides = [1, 1]} : vector<8x64xf32> to vector<8x8xf32>
      %c0_38 = arith.constant 0 : index
      %c0_39 = arith.constant 0 : index
      %c0_40 = arith.constant 0 : index
      %63 = vector.load %arg12[%c0_38, %c0_39, %c0_40] : memref<4x8x8xf32, #tpu.memory_space<vmem>>, vector<1x8x8xf32>
      %64 = vector.shape_cast %63 : vector<1x8x8xf32> to vector<8x8xf32>
      %65 = vector.shape_cast %62 : vector<8x8xf32> to vector<1x8x8xf32>
      tpu.vector_store %arg12[%c0_38, %c0_39, %c0_40], %65 {strides = array<i32>} : memref<4x8x8xf32, #tpu.memory_space<vmem>>, vector<1x8x8xf32>,
      %66 = vector.extract_strided_slice %61 {offsets = [0, 32], sizes = [8, 8], strides = [1, 1]} : vector<8x64xf32> to vector<8x8xf32>
      %c0_41 = arith.constant 0 : index
      %c0_42 = arith.constant 0 : index
      %c0_43 = arith.constant 0 : index
      %67 = vector.load %arg13[%c0_41, %c0_42, %c0_43] : memref<4x8x8xf32, #tpu.memory_space<vmem>>, vector<1x8x8xf32>
      %68 = vector.shape_cast %67 : vector<1x8x8xf32> to vector<8x8xf32>
      %69 = vector.shape_cast %66 : vector<8x8xf32> to vector<1x8x8xf32>
      tpu.vector_store %arg13[%c0_41, %c0_42, %c0_43], %69 {strides = array<i32>} : memref<4x8x8xf32, #tpu.memory_space<vmem>>, vector<1x8x8xf32>,
      %70 = vector.extract_strided_slice %61 {offsets = [0, 8], sizes = [8, 8], strides = [1, 1]} : vector<8x64xf32> to vector<8x8xf32>
      %c1 = arith.constant 1 : index
      %c0_44 = arith.constant 0 : index
      %c0_45 = arith.constant 0 : index
      %71 = vector.load %arg12[%c1, %c0_44, %c0_45] : memref<4x8x8xf32, #tpu.memory_space<vmem>>, vector<1x8x8xf32>
      %72 = vector.shape_cast %71 : vector<1x8x8xf32> to vector<8x8xf32>
      %73 = vector.shape_cast %70 : vector<8x8xf32> to vector<1x8x8xf32>
      tpu.vector_store %arg12[%c1, %c0_44, %c0_45], %73 {strides = array<i32>} : memref<4x8x8xf32, #tpu.memory_space<vmem>>, vector<1x8x8xf32>,
      %74 = vector.extract_strided_slice %61 {offsets = [0, 40], sizes = [8, 8], strides = [1, 1]} : vector<8x64xf32> to vector<8x8xf32>
      %c1_46 = arith.constant 1 : index
      %c0_47 = arith.constant 0 : index
      %c0_48 = arith.constant 0 : index
      %75 = vector.load %arg13[%c1_46, %c0_47, %c0_48] : memref<4x8x8xf32, #tpu.memory_space<vmem>>, vector<1x8x8xf32>
      %76 = vector.shape_cast %75 : vector<1x8x8xf32> to vector<8x8xf32>
      %77 = vector.shape_cast %74 : vector<8x8xf32> to vector<1x8x8xf32>
      tpu.vector_store %arg13[%c1_46, %c0_47, %c0_48], %77 {strides = array<i32>} : memref<4x8x8xf32, #tpu.memory_space<vmem>>, vector<1x8x8xf32>,
      %78 = vector.extract_strided_slice %61 {offsets = [0, 16], sizes = [8, 8], strides = [1, 1]} : vector<8x64xf32> to vector<8x8xf32>
      %c2 = arith.constant 2 : index
      %c0_49 = arith.constant 0 : index
      %c0_50 = arith.constant 0 : index
      %79 = vector.load %arg12[%c2, %c0_49, %c0_50] : memref<4x8x8xf32, #tpu.memory_space<vmem>>, vector<1x8x8xf32>
      %80 = vector.shape_cast %79 : vector<1x8x8xf32> to vector<8x8xf32>
      %81 = vector.shape_cast %78 : vector<8x8xf32> to vector<1x8x8xf32>
      tpu.vector_store %arg12[%c2, %c0_49, %c0_50], %81 {strides = array<i32>} : memref<4x8x8xf32, #tpu.memory_space<vmem>>, vector<1x8x8xf32>,
      %82 = vector.extract_strided_slice %61 {offsets = [0, 48], sizes = [8, 8], strides = [1, 1]} : vector<8x64xf32> to vector<8x8xf32>
      %c2_51 = arith.constant 2 : index
      %c0_52 = arith.constant 0 : index
      %c0_53 = arith.constant 0 : index
      %83 = vector.load %arg13[%c2_51, %c0_52, %c0_53] : memref<4x8x8xf32, #tpu.memory_space<vmem>>, vector<1x8x8xf32>
      %84 = vector.shape_cast %83 : vector<1x8x8xf32> to vector<8x8xf32>
      %85 = vector.shape_cast %82 : vector<8x8xf32> to vector<1x8x8xf32>
      tpu.vector_store %arg13[%c2_51, %c0_52, %c0_53], %85 {strides = array<i32>} : memref<4x8x8xf32, #tpu.memory_space<vmem>>, vector<1x8x8xf32>,
      %86 = vector.extract_strided_slice %61 {offsets = [0, 24], sizes = [8, 8], strides = [1, 1]} : vector<8x64xf32> to vector<8x8xf32>
      %c3 = arith.constant 3 : index
      %c0_54 = arith.constant 0 : index
      %c0_55 = arith.constant 0 : index
      %87 = vector.load %arg12[%c3, %c0_54, %c0_55] : memref<4x8x8xf32, #tpu.memory_space<vmem>>, vector<1x8x8xf32>
      %88 = vector.shape_cast %87 : vector<1x8x8xf32> to vector<8x8xf32>
      %89 = vector.shape_cast %86 : vector<8x8xf32> to vector<1x8x8xf32>
      tpu.vector_store %arg12[%c3, %c0_54, %c0_55], %89 {strides = array<i32>} : memref<4x8x8xf32, #tpu.memory_space<vmem>>, vector<1x8x8xf32>,
      %90 = vector.extract_strided_slice %61 {offsets = [0, 56], sizes = [8, 8], strides = [1, 1]} : vector<8x64xf32> to vector<8x8xf32>
      %c3_56 = arith.constant 3 : index
      %c0_57 = arith.constant 0 : index
      %c0_58 = arith.constant 0 : index
      %91 = vector.load %arg13[%c3_56, %c0_57, %c0_58] : memref<4x8x8xf32, #tpu.memory_space<vmem>>, vector<1x8x8xf32>
      %92 = vector.shape_cast %91 : vector<1x8x8xf32> to vector<8x8xf32>
      %93 = vector.shape_cast %90 : vector<8x8xf32> to vector<1x8x8xf32>
      tpu.vector_store %arg13[%c3_56, %c0_57, %c0_58], %93 {strides = array<i32>} : memref<4x8x8xf32, #tpu.memory_space<vmem>>, vector<1x8x8xf32>,
    } else {
    }
    %c0 = arith.constant 0 : index
    %c0_1 = arith.constant 0 : index
    %c0_2 = arith.constant 0 : index
    %3 = vector.load %arg2[%c0, %c0_1, %c0_2] : memref<1x8x32xf32, #tpu.memory_space<vmem>>, vector<1x8x32xf32>
    %4 = vector.shape_cast %3 : vector<1x8x32xf32> to vector<8x32xf32>
    %c0_3 = arith.constant 0 : index
    %c0_4 = arith.constant 0 : index
    %5 = vector.load %arg4[%c0_3, %c0_4] : memref<32x32xf32, #tpu.memory_space<vmem>>, vector<32x32xf32>
    %cst = arith.constant dense<0.000000e+00> : vector<8x32xf32>
    %6 = tpu.matmul %4, %5, %cst {dimension_numbers = #tpu.dot_dimension_numbers<[1], [0], [0], [1], [0, 0, 1, 1], [], []>} : vector<8x32xf32>, vector<32x32xf32>, vector<8x32xf32> -> vector<8x32xf32>
    %c0_5 = arith.constant 0 : index
    %c0_6 = arith.constant 0 : index
    %7 = vector.load %arg5[%c0_5, %c0_6] : memref<1x32xf32, #tpu.memory_space<vmem>>, vector<1x32xf32>
    %8 = vector.broadcast %7 : vector<1x32xf32> to vector<8x32xf32>
    %9 = arith.addf %6, %8 : vector<8x32xf32>
    %cst_7 = arith.constant 0.353553385 : f32
    %10 = vector.broadcast %cst_7 : f32 to vector<8x32xf32>
    %11 = arith.mulf %9, %10 : vector<8x32xf32>
    %12 = vector.extract_strided_slice %11 {offsets = [0, 0], sizes = [8, 8], strides = [1, 1]} : vector<8x32xf32> to vector<8x8xf32>
    %13 = vector.extract_strided_slice %11 {offsets = [0, 8], sizes = [8, 8], strides = [1, 1]} : vector<8x32xf32> to vector<8x8xf32>
    %14 = vector.extract_strided_slice %11 {offsets = [0, 16], sizes = [8, 8], strides = [1, 1]} : vector<8x32xf32> to vector<8x8xf32>
    %15 = vector.extract_strided_slice %11 {offsets = [0, 24], sizes = [8, 8], strides = [1, 1]} : vector<8x32xf32> to vector<8x8xf32>
    %16 = vector.shape_cast %12 : vector<8x8xf32> to vector<1x8x8xf32>
    %17 = vector.shape_cast %13 : vector<8x8xf32> to vector<1x8x8xf32>
    %18 = vector.shape_cast %14 : vector<8x8xf32> to vector<1x8x8xf32>
    %19 = vector.shape_cast %15 : vector<8x8xf32> to vector<1x8x8xf32>
    %20 = tpu.concatenate %16, %17, %18, %19 in 0 : vector<1x8x8xf32>, vector<1x8x8xf32>, vector<1x8x8xf32>, vector<1x8x8xf32> -> vector<4x8x8xf32>
    %c0_8 = arith.constant 0 : index
    %c0_9 = arith.constant 0 : index
    %c0_10 = arith.constant 0 : index
    %21 = vector.load %arg12[%c0_8, %c0_9, %c0_10] : memref<4x8x8xf32, #tpu.memory_space<vmem>>, vector<4x8x8xf32>
    %c0_11 = arith.constant 0 : index
    %c0_12 = arith.constant 0 : index
    %c0_13 = arith.constant 0 : index
    %22 = vector.load %arg13[%c0_11, %c0_12, %c0_13] : memref<4x8x8xf32, #tpu.memory_space<vmem>>, vector<4x8x8xf32>
    %cst_14 = arith.constant dense<0.000000e+00> : vector<4x8x8xf32>
    %23 = tpu.matmul %20, %21, %cst_14 {dimension_numbers = #tpu.dot_dimension_numbers<[2], [2], [1], [1], [0, 0, 0, 1, 1, 1], [0], [0]>} : vector<4x8x8xf32>, vector<4x8x8xf32>, vector<4x8x8xf32> -> vector<4x8x8xf32>
    %cst_15 = arith.constant dense<0xFF800000> : vector<4x8xf32>
    %24 = vector.multi_reduction <maximumf>, %23, %cst_15 [2] : vector<4x8x8xf32> to vector<4x8xf32>
    %25 = vector.shape_cast %24 : vector<4x8xf32> to vector<4x8x1xf32>
    %26 = vector.broadcast %25 : vector<4x8x1xf32> to vector<4x8x8xf32>
    %27 = arith.subf %23, %26 : vector<4x8x8xf32>
    %28 = math.exp %27 : vector<4x8x8xf32>
    %cst_16 = arith.constant dense<0.000000e+00> : vector<4x8xf32>
    %29 = vector.multi_reduction <add>, %28, %cst_16 [2] : vector<4x8x8xf32> to vector<4x8xf32>
    %30 = vector.shape_cast %29 : vector<4x8xf32> to vector<4x8x1xf32>
    %31 = tpu.reciprocal %30 {approx = true} : vector<4x8x1xf32> -> vector<4x8x1xf32>
    %32 = vector.broadcast %31 : vector<4x8x1xf32> to vector<4x8x8xf32>
    %33 = arith.mulf %28, %32 : vector<4x8x8xf32>
    %c0_17 = arith.constant 0 : index
    %c0_18 = arith.constant 0 : index
    %c0_19 = arith.constant 0 : index
    %c0_20 = arith.constant 0 : index
    %34 = vector.load %arg11[%c0_17, %c0_18, %c0_19, %c0_20] : memref<1x4x8x8xf32, #tpu.memory_space<vmem>>, vector<1x4x8x8xf32>
    %35 = vector.shape_cast %34 : vector<1x4x8x8xf32> to vector<4x8x8xf32>
    %36 = vector.shape_cast %33 : vector<4x8x8xf32> to vector<1x4x8x8xf32>
    tpu.vector_store %arg11[%c0_17, %c0_18, %c0_19, %c0_20], %36 {strides = array<i32>} : memref<1x4x8x8xf32, #tpu.memory_space<vmem>>, vector<1x4x8x8xf32>,
    %cst_21 = arith.constant dense<0.000000e+00> : vector<4x8x8xf32>
    %37 = tpu.matmul %33, %22, %cst_21 {dimension_numbers = #tpu.dot_dimension_numbers<[2], [1], [1], [2], [0, 0, 0, 1, 1, 2], [0], [0]>} : vector<4x8x8xf32>, vector<4x8x8xf32>, vector<4x8x8xf32> -> vector<4x8x8xf32>
    %38 = vector.extract_strided_slice %37 {offsets = [0, 0, 0], sizes = [1, 8, 8], strides = [1, 1, 1]} : vector<4x8x8xf32> to vector<1x8x8xf32>
    %39 = vector.shape_cast %38 : vector<1x8x8xf32> to vector<8x8xf32>
    %40 = vector.extract_strided_slice %37 {offsets = [1, 0, 0], sizes = [1, 8, 8], strides = [1, 1, 1]} : vector<4x8x8xf32> to vector<1x8x8xf32>
    %41 = vector.shape_cast %40 : vector<1x8x8xf32> to vector<8x8xf32>
    %42 = vector.extract_strided_slice %37 {offsets = [2, 0, 0], sizes = [1, 8, 8], strides = [1, 1, 1]} : vector<4x8x8xf32> to vector<1x8x8xf32>
    %43 = vector.shape_cast %42 : vector<1x8x8xf32> to vector<8x8xf32>
    %44 = vector.extract_strided_slice %37 {offsets = [3, 0, 0], sizes = [1, 8, 8], strides = [1, 1, 1]} : vector<4x8x8xf32> to vector<1x8x8xf32>
    %45 = vector.shape_cast %44 : vector<1x8x8xf32> to vector<8x8xf32>
    %46 = tpu.concatenate %39, %41, %43, %45 in 1 : vector<8x8xf32>, vector<8x8xf32>, vector<8x8xf32>, vector<8x8xf32> -> vector<8x32xf32>
    %c0_22 = arith.constant 0 : index
    %c0_23 = arith.constant 0 : index
    %47 = vector.load %arg8[%c0_22, %c0_23] : memref<32x32xf32, #tpu.memory_space<vmem>>, vector<32x32xf32>
    %cst_24 = arith.constant dense<0.000000e+00> : vector<8x32xf32>
    %48 = tpu.matmul %46, %47, %cst_24 {dimension_numbers = #tpu.dot_dimension_numbers<[1], [0], [0], [1], [0, 0, 1, 1], [], []>} : vector<8x32xf32>, vector<32x32xf32>, vector<8x32xf32> -> vector<8x32xf32>
    %c0_25 = arith.constant 0 : index
    %c0_26 = arith.constant 0 : index
    %49 = vector.load %arg9[%c0_25, %c0_26] : memref<1x32xf32, #tpu.memory_space<vmem>>, vector<1x32xf32>
    %50 = vector.broadcast %49 : vector<1x32xf32> to vector<8x32xf32>
    %51 = arith.addf %48, %50 : vector<8x32xf32>
    %c0_27 = arith.constant 0 : index
    %c0_28 = arith.constant 0 : index
    %c0_29 = arith.constant 0 : index
    %52 = vector.load %arg10[%c0_27, %c0_28, %c0_29] : memref<1x8x32xf32, #tpu.memory_space<vmem>>, vector<1x8x32xf32>
    %53 = vector.shape_cast %52 : vector<1x8x32xf32> to vector<8x32xf32>
    %54 = vector.shape_cast %51 : vector<8x32xf32> to vector<1x8x32xf32>
    tpu.vector_store %arg10[%c0_27, %c0_28, %c0_29], %54 {strides = array<i32>} : memref<1x8x32xf32, #tpu.memory_space<vmem>>, vector<1x8x32xf32>,
    return
  }
  func.func @transform_0(%arg0: i32, %arg1: i32) -> (i32, i32, i32) {
    %c0_i32 = arith.constant 0 : i32
    %c0_i32_0 = arith.constant 0 : i32
    return %arg0, %arg1, %c0_i32 : i32, i32, i32
  }
  func.func @transform_1(%arg0: i32, %arg1: i32) -> (i32, i32, i32) {
    %c0_i32 = arith.constant 0 : i32
    %c0_i32_0 = arith.constant 0 : i32
    %c0_i32_1 = arith.constant 0 : i32
    return %arg0, %c0_i32, %c0_i32_0 : i32, i32, i32
  }
  func.func @transform_2(%arg0: i32, %arg1: i32) -> (i32, i32) {
    %c0_i32 = arith.constant 0 : i32
    %c0_i32_0 = arith.constant 0 : i32
    %c0_i32_1 = arith.constant 0 : i32
    return %c0_i32, %c0_i32_0 : i32, i32
  }
  func.func @transform_3(%arg0: i32, %arg1: i32) -> (i32, i32) {
    %c0_i32 = arith.constant 0 : i32
    %c0_i32_0 = arith.constant 0 : i32
    %c0_i32_1 = arith.constant 0 : i32
    return %c0_i32, %c0_i32_0 : i32, i32
  }
  func.func @transform_4(%arg0: i32, %arg1: i32) -> (i32, i32) {
    %c0_i32 = arith.constant 0 : i32
    %c0_i32_0 = arith.constant 0 : i32
    %c0_i32_1 = arith.constant 0 : i32
    return %c0_i32, %c0_i32_0 : i32, i32
  }
  func.func @transform_5(%arg0: i32, %arg1: i32) -> (i32, i32) {
    %c0_i32 = arith.constant 0 : i32
    %c0_i32_0 = arith.constant 0 : i32
    %c0_i32_1 = arith.constant 0 : i32
    return %c0_i32, %c0_i32_0 : i32, i32
  }
  func.func @transform_6(%arg0: i32, %arg1: i32) -> (i32, i32) {
    %c0_i32 = arith.constant 0 : i32
    %c0_i32_0 = arith.constant 0 : i32
    %c0_i32_1 = arith.constant 0 : i32
    return %c0_i32, %c0_i32_0 : i32, i32
  }
  func.func @transform_7(%arg0: i32, %arg1: i32) -> (i32, i32) {
    %c0_i32 = arith.constant 0 : i32
    %c0_i32_0 = arith.constant 0 : i32
    %c0_i32_1 = arith.constant 0 : i32
    return %c0_i32, %c0_i32_0 : i32, i32
  }
  func.func @transform_8(%arg0: i32, %arg1: i32) -> (i32, i32, i32) {
    %c0_i32 = arith.constant 0 : i32
    %c0_i32_0 = arith.constant 0 : i32
    return %arg0, %arg1, %c0_i32 : i32, i32, i32
  }
  func.func @transform_9(%arg0: i32, %arg1: i32) -> (i32, i32, i32, i32) {
    %c0_i32 = arith.constant 0 : i32
    %c0_i32_0 = arith.constant 0 : i32
    %c0_i32_1 = arith.constant 0 : i32
    return %arg0, %c0_i32, %arg1, %c0_i32_0 : i32, i32, i32, i32
  }
}

</mosaic_0001>

<bundles_post_ra>
// kernel: tpu_custom_call.1
= control target key start
LH: loop header
LB: loop body
LE: loop exit
PB: predicated region body
PF: predicated region fallthrough
CT: control target
= control target key end

     0   :  { %s2599_s0 = inlined_call_operand.hbm [shape: f32[2,8,32], index: 0, kind: input, shape index: {}]   ;;  %s2600_s1 = inlined_call_operand.hbm [shape: f32[2,8,32], index: 1, kind: input, shape index: {}]   ;;  %s2601_s2 = inlined_call_operand.hbm [shape: f32[32,32], index: 2, kind: input, shape index: {}]   ;;  %s2602_s3 = inlined_call_operand.vmem [shape: f32[1,32], index: 3, kind: input, shape index: {}]   ;;  %s2603_s4 = inlined_call_operand.hbm [shape: f32[32,64], index: 4, kind: input, shape index: {}]   ;;  %s2604_s5 = inlined_call_operand.vmem [shape: f32[1,64], index: 5, kind: input, shape index: {}]   ;;  %s2605_s6 = inlined_call_operand.hbm [shape: f32[32,32], index: 6, kind: input, shape index: {}]   ;;  %s2606_s7 = inlined_call_operand.vmem [shape: f32[1,32], index: 7, kind: input, shape index: {}]   ;;  %s2607_s8 = inlined_call_operand.hbm [shape: f32[2,8,32], index: 8, kind: output, shape index: {0}]   ;;  %s2608_s9 = inlined_call_operand.hbm [shape: f32[2,4,8,8], index: 9, kind: output, shape index: {1}]  }
   0x1   :  { %2614 = sst [smem:[#allocation25_spill]] %s2599_s0 }
   0x2   :  { %2615 = sst [smem:[#allocation26_spill]] %s2601_s2 }
   0x3   :  { %2616 = sst [smem:[#allocation27_spill]] %s2603_s4 }
   0x4   :  { %2617 = sst [smem:[#allocation28_spill]] %s2605_s6 }
   0x5   :  { %15 = vsyncpa [#allocation5], 0 }
   0x6   :  { %17 = vsyncpa [#allocation5 + $0x1], 0 }
   0x7   :  { %18 = vsyncpa [#allocation8], 0 }
   0x8   :  { %20 = vsyncpa [#allocation8 + $0x1], 0 }
   0x9   :  { %21 = vsyncpa [#allocation11], 0 }
   0xa   :  { %22 = vsyncpa [#allocation6], 0 }
   0xb   :  { %24 = vsyncpa [#allocation6 + $0x1], 0 }
   0xc   :  { %25 = vsyncpa [#allocation15], 0 }
   0xd   :  { %27 = vsyncpa [#allocation15 + $0x1], 0  ;;  %s2245_s30 = smov 0   ;;  %s2247_s10 = smov 0  }
   0xe   :  { %s2249_s11 = smov 0   ;;  %s2251_s12 = smov 0  }
   0xf   :  { %s2253_s13 = smov 0   ;;  %s2255_s14 = smov 0  }
  0x10 LB: > { %2618 = sst [smem:[#allocation22_spill]] %s2151_s30  ;;  %s2276_s15 = sadd.s32 4294967295, %s2171_s14   ;;  %s2171_s14 = sphi %s2255_s14, %s33_s14   ;;  %s2167_s13 = sphi %s2253_s13, %s2646_s13   ;;  %s2163_s12 = sphi %s2251_s12, %s2645_s12   ;;  %s2159_s11 = sphi %s2249_s11, %s2644_s11   ;;  %s2155_s10 = sphi %s2247_s10, %s2643_s10   ;;  %s2151_s30 = sphi %s2245_s30, %s2642_s30  }
  0x11   : > { %s1633_s16 = sadd.s32 4294967294, %s2171_s14   ;;  %p67_p0 = scmp.ne.s32.totalorder %s2155_s10, %s2151_s30 }
  0x12   : > { %p2609_p1 = scmp.eq.s32.totalorder %s2276_s15, 0  ;;  %p251_p3 = scmp.eq.s32.totalorder %s1633_s16, 1 }
  0x13   : > { %p1634_p5 = scmp.ge.s32.totalorder %s2171_s14, 1  ;;  %p286_p7 = scmp.lt.s32.totalorder %s2171_s14, 3 }
  0x14   : > { %p2285_p4 = por %p2609_p1, %p67_p0  ;;  %p2290_p6 = por %p251_p3, %p67_p0 }
  0x15   : > { %p2295_p8 = pnand %p1634_p5, %p286_p7  ;;  %s2173_s20 = smov [#allocation9]  }
  0x16   : > { %s2619_s17 = scalar_select %p2285_p4, 1, 0 }
  0x17   : > { %s2620_s18 = scalar_select %p2290_p6, 1, 0 }
  0x18   : > { %s298_s21 = sshll.u32 %s2173_s20, 4  ;;  %p1801_p9 = pneg %p2295_p8  ;;  %s299_s21 = int_to_ptr.vmem [resolvable:$true] %s298_s21 }
  0x19   : > { %2621 = sst [smem:[#allocation23_spill]] %s2620_s18  ;;  %s2174_s23 = smov [#allocation10]  }
  0x1a   : > { %p2304_p11 = pnand %p1801_p9, %p2609_p1  ;;  %s314_s24 = sshll.u32 %s2174_s23, 4  ;;  %s315_s24 = int_to_ptr.vmem [resolvable:$true] %s314_s24 }
  0x1b   : > { %s2175_s25 = smov [#allocation12]   ;;  %s1926_s27 = scalar_lea.vmem %s299_s21, 512 }
  0x1c   : > { %s330_s26 = sshll.u32 %s2175_s25, 4  ;;  %p1917_p12 = pneg %p2304_p11  ;;  %s331_s26 = int_to_ptr.vmem [resolvable:$true] %s330_s26 }
  0x1d   : > { %p1927_p13 = scmp.ne.s32.totalorder %s299_s21, %s1926_s27  ;;  %p1934_p5 = scmp.lt.s32.totalorder %s299_s21, %s299_s21 }
  0x1e   : > { %p1935_p7 = scmp.lt.s32.totalorder %s1926_s27, %s1926_s27 }
  0x1f   : > { %p1929_p0 = pnand %p1927_p13, %p1917_p12 }
  0x20   : > { %p1936_p9 = por %p1935_p7, %p1934_p5 }
  0x21   : > { %p1930_p3 = pneg %p1929_p0 }
  0x23   : > { %p1937_p10 = pnand %p1936_p9, %p1930_p3 }
  0x25   : > { %1940 = shalt.err (!%p1937_p10)
}
  0x26   : > { %s2176_s28 = smov 128   ;;  %s2177_s29 = smov 8  }
  0x27   : > { %s2624_s2 = sld [smem:[#allocation26_spill]]  ;;  %s1952_s23 = scalar_lea.vmem %s315_s24, 512 }
  0x28   : > { %p1953_p1 = scmp.ne.s32.totalorder %s315_s24, %s1952_s23  ;;  %p1960_p2 = scmp.lt.s32.totalorder %s315_s24, %s315_s24 }
  0x29   : > { %p1961_p6 = scmp.lt.s32.totalorder %s1952_s23, %s1952_s23 }
  0x2a   : > { %p1955_p13 = pnand %p1953_p1, %p1917_p12 }
  0x2b   : > { %p1962_p5 = por %p1961_p6, %p1960_p2 }
  0x2c   : > { %p1956_p0 = pneg %p1955_p13 }
  0x2d   : > { %1804 = dma.hbm_to_vmem [thread:$0]  (!%p2304_p11), %s2624_s2, 512, %s299_s21, [#allocation8], %s2176_s28, %s2176_s28, %s2177_s29  }
  0x2e   : > { %p1963_p3 = pnand %p1962_p5, %p1956_p0 }
  0x30   : > { %1966 = shalt.err (!%p1963_p3)
}
  0x31   : > { %s2625_s4 = sld [smem:[#allocation27_spill]]  ;;  %s1978_s21 = scalar_lea.vmem %s331_s26, 512 }
  0x32   : > { %p1979_p10 = scmp.ne.s32.totalorder %s331_s26, %s1978_s21  ;;  %p1986_p9 = scmp.lt.s32.totalorder %s331_s26, %s331_s26 }
  0x33   : > { %p1987_p13 = scmp.lt.s32.totalorder %s1978_s21, %s1978_s21 }
  0x34   : > { %p1981_p7 = pnand %p1979_p10, %p1917_p12 }
  0x35   : > { %p1988_p4 = por %p1987_p13, %p1986_p9 }
  0x36   : > { %p1982_p1 = pneg %p1981_p7 }
  0x37   : > { %1807 = dma.hbm_to_vmem [thread:$0]  (!%p2304_p11), %s2625_s4, 512, %s315_s24, [#allocation11], %s2176_s28, %s2176_s28, %s2177_s29  }
  0x38   : > { %p1989_p2 = pnand %p1988_p4, %p1982_p1 }
  0x3a   : > { %1992 = shalt.err (!%p1989_p2)
}
  0x3b   : > { %s2626_s6 = sld [smem:[#allocation28_spill]]  ;;  %s54_s24 = sadd.s32 1, %s2159_s11 }
  0x3c   : > { %s45_s23 = sadd.s32 1, %s2167_s13  ;;  %p61_p4 = scmp.ne.s32.totalorder %s2159_s11, %s2155_s10 }
  0x3d   : > { %p47_p6 = scmp.ge.s32.totalorder %s45_s23, 2  ;;  %p62_p12 = scmp.eq.s32.totalorder %s2171_s14, 0 }
  0x3e   : > { %p2627_p0 = scmp.eq.s32.totalorder %s2276_s15, 1  ;;  %p1828_p3 = scmp.lt.s32.totalorder %s2171_s14, 2 }
  0x3f   : > { %s2648_s23 = smov (%p47_p6, %s45_s23), 0  ;;  %p63_p10 = por %p62_p12, %p61_p4 }
  0x40   : > { %p2341_p5 = por %p2627_p0, %p61_p4  ;;  %2629 = sst [smem:[#allocation24_spill]] %s2648_s23 }
  0x41   : > { %1810 = dma.hbm_to_vmem [thread:$0]  (!%p2304_p11), %s2626_s6, 512, %s331_s26, [#allocation11], %s2176_s28, %s2176_s28, %s2177_s29  }
  0x42   : > { %s347_s25 = sand.u32 1, %s2159_s11   ;;  %s49_s27 = ssub.s32 %s2167_s13, %s2648_s23 }
  0x43   : > { %p52_p11 = scmp.eq.s32.totalorder %s49_s27, 0  ;;  %s1639_s26 = sshll.u32 %s347_s25, 3 }
  0x44   : > { %s1640_s28 = sshll.u32 %s2167_s13, 7  ;;  %s2630_s0 = sld [smem:[#allocation25_spill]] }
  0x45   : > { %s2353_s29 = scalar_select %p52_p11, %s2159_s11, %s54_s24  }
  0x46   : > { %s351_s2 = scalar_lea.vmem [#allocation4], %s1639_s26  ;;  %p2360_p7 = pnand %p1828_p3, %p63_p10 }
  0x47   : > { %s359_s4 = sshll.u32 %s351_s2, 4  ;;  %s2367_s27 = scalar_lea.hbm %s2600_s1, %s1640_s28  ;;  %s360_s4 = int_to_ptr.vmem [resolvable:$true] %s359_s4 }
  0x48   : > { %s366_s24 = sand.u32 1, %s2171_s14   ;;  %s348_s23 = scalar_lea.sflag [#allocation5], %s347_s25 }
  0x49   : > { %p1995_p1 = pneg %p2360_p7  ;;  %s2006_s21 = scalar_lea.vmem %s360_s4, 128 }
  0x4a   : > { %s357_s20 = scalar_lea.hbm %s2630_s0, %s1640_s28  ;;  %p2007_p9 = scmp.ne.s32.totalorder %s360_s4, %s2006_s21 }
  0x4b   : > { %s2178_s2 = smov [#allocation4]  }
  0x4c   : > { %p2009_p13 = pnand %p2007_p9, %p1995_p1  ;;  %s2011_s16 = sshll.u32 %s2178_s2, 4  ;;  %s2012_s16 = int_to_ptr.vmem [resolvable:$false] %s2011_s16 }
  0x4d   : > { %s2013_s0 = scalar_lea.vmem %s2012_s16, 256  ;;  %p2014_p4 = scmp.lt.s32.totalorder %s360_s4, %s2012_s16 }
  0x4e   : > { %p2010_p2 = pneg %p2009_p13  ;;  %p2015_p6 = scmp.lt.s32.totalorder %s2013_s0, %s2006_s21 }
  0x50   : > { %p2016_p12 = por %p2015_p6, %p2014_p4 }
  0x52   : > { %p2017_p0 = pnand %p2016_p12, %p2010_p2 }
  0x54   : > { %2020 = shalt.err (!%p2017_p0)
}
  0x55   : > { %1814 = dma.hbm_to_vmem [thread:$0]  (!%p2360_p7), %s357_s20, 128, %s360_s4, %s348_s23  }
  0x56   : > { %s370_s30 = scalar_lea.vmem [#allocation7], %s1639_s26  ;;  %s367_s25 = scalar_lea.sflag [#allocation8], %s366_s24 }
  0x57   : > { %s377_s18 = sshll.u32 %s370_s30, 4  ;;  %s2179_s2 = smov [#allocation7]   ;;  %s378_s18 = int_to_ptr.vmem [resolvable:$true] %s377_s18 }
  0x58   : > { %s2034_s28 = scalar_lea.vmem %s378_s18, 128  ;;  %s2039_s16 = sshll.u32 %s2179_s2, 4  ;;  %s2040_s16 = int_to_ptr.vmem [resolvable:$false] %s2039_s16 }
  0x59   : > { %p2035_p3 = scmp.ne.s32.totalorder %s378_s18, %s2034_s28  ;;  %s2041_s0 = scalar_lea.vmem %s2040_s16, 256 }
  0x5a   : > { %p2042_p9 = scmp.lt.s32.totalorder %s378_s18, %s2040_s16  ;;  %p2043_p13 = scmp.lt.s32.totalorder %s2041_s0, %s2034_s28 }
  0x5b   : > { %p2037_p10 = pnand %p2035_p3, %p1995_p1 }
  0x5c   : > { %p2044_p2 = por %p2043_p13, %p2042_p9 }
  0x5d   : > { %p2038_p11 = pneg %p2037_p10 }
  0x5f   : > { %p2045_p4 = pnand %p2044_p2, %p2038_p11 }
  0x61   : > { %2048 = shalt.err (!%p2045_p4)
}
  0x62   : > { %1817 = dma.hbm_to_vmem [thread:$0]  (!%p2360_p7), %s2367_s27, 128, %s378_s18, %s367_s25  }
  0x63   : > { %386 = sbr.rel (%p2295_p8) target bundleno = 1477 (0x5c5), region = 52  ;;  %s2386_s4 = sand.u32 (!%p2295_p8), 1, %s2155_s10  }
  0x64   : > { %s2389_s23 = sshll.u32 (!%p2295_p8), %s2386_s4, 3  ;;  %s389_s26 = scalar_lea.sflag (!%p2295_p8), [#allocation5], %s2386_s4 }
  0x65   : > { %s392_s20 = scalar_lea.vmem (!%p2295_p8), [#allocation4], %s2389_s23  ;;  %p2632_p1 = scmp.ne.s32.totalorder (!%p2295_p8), %s2619_s17, 0 }
  0x68   : > { %2126 = dma.done.wait (%p2632_p1), %s389_s26, 128  }
  0x69   : > { %2128 = vsyncadd (%p2632_p1), %s389_s26, 4294967168  ;;  %s397_s6 = sand.u32 1, %s2276_s15   ;;  %s401_s27 = scalar_lea.vmem [#allocation7], %s2389_s23 }
  0x6a   : > { %s398_s19 = scalar_lea.sflag [#allocation8], %s397_s6 }
  0x6b   : > { %2130 = dma.done.wait (%p2632_p1), %s398_s19, 128  }
  0x6c   : > { %2132 = vsyncadd (%p2632_p1), %s398_s19, 4294967168  ;;  %p2633_p8 = scmp.eq.s32.totalorder %s2276_s15, 0 }
  0x6e   : > { %2134 = dma.done.wait (%p2633_p8), [#allocation8], 512   ;;  %p2634_p7 = pmov %p2633_p8 }
  0x70   : > { %2136 = vsyncadd (%p2634_p7), [#allocation8], 4294966784  ;;  %p2635_p6 = pmov %p2634_p7 }
  0x72   : > { %2138 = dma.done.wait (%p2635_p6), [#allocation11], 1024   ;;  %p2636_p12 = pmov %p2635_p6 }
  0x73   : > { %v2180_v0 = vmov 0.0   ;;  %vm2181_vm0 = vmmov 0   ;;  %v466_v1 = vld [vmem:[#allocation10 + $0x18] sm:$0xff]  ;;  %v465_v2 = vld [vmem:[#allocation10 + $0x10] sm:$0xff]  ;;  %v464_v4 = vld [vmem:[#allocation10 + $0x8] sm:$0xff]  ;;  %vm474_vm1 = vcmask 261120  }
  0x74   : > { %2140 = vsyncadd (%p2636_p12), [#allocation11], 4294966272  ;;  %1708 = vmatprep.subr.mxu0 %v2180_v0  ;;  %1716 = vmatprep.mubr.msk.f32.mxu0 %vm2181_vm0, %v2180_v0  ;;  %v589_v3 = vld [vmem:[#allocation9 + $0x18] sm:$0xff]  ;;  %v588_v5 = vld [vmem:[#allocation9 + $0x10] sm:$0xff]  ;;  %vm548_vm2 = vcmask 64512   ;;  %s2182_s30 = smov 104  }
  0x75   : > { %1719 = vmatprep.subr.mxu1 %v2180_v0  ;;  %1727 = vmatprep.mubr.msk.f32.mxu1 %vm2181_vm0, %v2180_v0  ;;  %v587_v6 = vld [vmem:[#allocation9 + $0x8] sm:$0xff]  ;;  %v463_v7 = vld [vmem:[#allocation10] sm:$0xff]  ;;  %v462_v8 = vld [vmem:[%s401_s27] sm:$0xff]  ;;  %s2183_s18 = smov 120   ;;  %s2184_s25 = smov 112   ;;  %vm1341_vm3 = vcmask 130048  }
  0x76   : > { %1709 = vmatpush3.msra.mxu0 %v466_v1  ;;  %1720 = vmatpush3.msra.mxu1 %v589_v3  ;;  %v586_v9 = vld [vmem:[#allocation9] sm:$0xff]  ;;  %s2185_s28 = smov 96   ;;  %s2186_s2 = smov 80   ;;  %vm1343_vm4 = vcmask 195584  }
  0x77   : > { %1710 = vmatprep.subr.mxu0 %v2180_v0  ;;  %1721 = vmatprep.subr.mxu1 %v2180_v0  ;;  %v585_v10 = vld [vmem:[%s392_s20] sm:$0xff]  ;;  %s2187_s16 = smov 72   ;;  %s2188_s0 = smov 88  }
  0x78   : > { %1711 = vmatpush3.msra.mxu0 %v465_v2  ;;  %1722 = vmatpush3.msra.mxu1 %v588_v5  ;;  %v1651_v11 = vld [vmem:[%s2604_s5] ss:$0 sm:$0xff]  ;;  %s1650_s26 = sshll.u32 %s2386_s4, 5  ;;  %s2189_s6 = smov 16  }
  0x79   : > { %1712 = vmatprep.subr.mxu0 %v2180_v0  ;;  %1723 = vmatprep.subr.mxu1 %v2180_v0  ;;  %v1653_v12 = vld [vmem:[%s2602_s3] ss:$0 sm:$0xff]  ;;  %s2484_s20 = scalar_lea.vmem [#allocation14], %s1650_s26  ;;  %s2190_s19 = smov 8  }
  0x7a   : > { %1713 = vmatpush3.msra.mxu0 %v464_v4  ;;  %1724 = vmatpush3.msra.mxu1 %v587_v6  ;;  %s2191_s27 = smov 24   ;;  %s1676_s15 = sshll.u32 %s2163_s12, 9 }
  0x7b   : > { %1714 = vmatprep.subr.mxu0 %v2180_v0  ;;  %1725 = vmatprep.subr.mxu1 %v2180_v0  ;;  %s1464_s17 = sshll.u32 %s2484_s20, 4  ;;  %s2522_s17 = int_to_ptr.vmem [resolvable:$true] %s1464_s17 }
  0x7c   : > { %1715 = vmatpush3.msra.mxu0 %v463_v7  ;;  %1726 = vmatpush3.msra.mxu1 %v586_v9 }
  0x7d   : > { %1717 = vmatmul.mubr.msk.f32.vlgmr.msra.gmra.mxu0 %vm474_vm1, %v462_v8  ;;  %1728 = vmatmul.mubr.msk.f32.vlgmr.msra.gmra.mxu1 %vm474_vm1, %v585_v10 }
  0x7e   : > { %1730 = vmatprep.subr.mxu1 %v2180_v0  ;;  %1732 = vmatprep.mubr.msk.f32.mxu1 %vm2181_vm0, %v2180_v0 }
  0x7f   : > { %1740 = vmatprep.subr.mxu0 %v2180_v0  ;;  %1742 = vmatprep.mubr.msk.f32.mxu0 %vm2181_vm0, %v2180_v0 }
 0x13d   : > { %v544_v13 = vpop.f32.mrf.mxu0  ;;  %v667_v15 = vpop.f32.mrf.mxu1 }
 0x13e   : > { %v2439_v14 = vadd.f32 %v1651_v11, %v544_v13  ;;  %v668_v17 = vadd.f32 %v1653_v12, %v667_v15 }
 0x13f   : > { %v1718_v16 = vpop.f32.mrf.mxu0  ;;  %v1729_v18 = vpop.f32.mrf.mxu1 }
 0x140   : > { %549 = vst.msk [vmem:[#allocation2] sm:$0xff] %vm548_vm2, %v2439_v14  ;;  %575 = vrot.lane.b32.xlu1 %v2439_v14, %s2182_s30  ;;  %555 = vrot.lane.b32.xlu0 %v2439_v14, %s2183_s18  ;;  %v671_v19 = vmul.f32 0.35355338, %v668_v17 }
 0x144   : > { %565 = vrot.lane.b32.xlu0 %v2439_v14, %s2184_s25  ;;  %673 = vrot.lane.b32.xlu1 %v671_v19, %s2183_s18  ;;  %s1436_s18 = scalar_lea.sflag [#allocation15], %s2386_s4 }
 0x147   : > { %v679_v20 = vld [vmem:[#allocation2] sm:$0xff] }
 0x148   : > { %1731 = vmatpush3.xpose.msk.msra.mxu1 %vm548_vm2, %v679_v20  ;;  %677 = vrot.lane.b32.xlu1 %v671_v19, %s2182_s30  ;;  %s2520_s30 = scalar_lea.hbm %s2608_s9, %s1676_s15 }
 0x149   : > { %675 = vrot.lane.b32.xlu0 %v671_v19, %s2184_s25  ;;  %1735 = vmatprep.subr.mxu1 %v2180_v0  ;;  %s2049_s25 = scalar_lea.vmem %s2522_s17, 512 }
 0x14a   : > { %p2050_p0 = scmp.ne.s32.totalorder %s2522_s17, %s2049_s25 }
 0x14b   : > { %1733 = vmatmul.mubr.msk.f32.vlgmr.msra.gmra.mxu1 %vm548_vm2, %v671_v19  ;;  %v1348_v19 = vld [vmem:[#allocation12 + $0x18] sm:$0xff] }
 0x14c   : > { %1737 = vmatprep.mubr.msk.f32.mxu1 %vm2181_vm0, %v2180_v0  ;;  %p2051_p3 = pnand %p2050_p0, %p2341_p5 }
 0x14e   : > { %p2052_p10 = pneg %p2051_p3 }
 0x1b2   : > { %v576_v21 = vpop.permute.xlu1 %575  ;;  %v556_v22 = vpop.permute.xlu0 %555 }
 0x1b3   : > { %579 = vst.msk [vmem:[#allocation2 + $0x18] sm:$0xff] %vm548_vm2, %v576_v21  ;;  %559 = vst.msk [vmem:[#allocation2 + $0x8] sm:$0xff] %vm548_vm2, %v556_v22  ;;  %v1347_v22 = vld [vmem:[#allocation12 + $0x10] sm:$0xff] }
 0x1b6   : > { %v566_v23 = vpop.permute.xlu0 %565  ;;  %v674_v24 = vpop.permute.xlu1 %673 }
 0x1b7   : > { %569 = vst.msk [vmem:[#allocation2 + $0x10] sm:$0xff] %vm548_vm2, %v566_v23  ;;  %v1346_v23 = vld [vmem:[#allocation12 + $0x8] sm:$0xff] }
 0x1ba   : > { %v680_v25 = vld [vmem:[#allocation2 + $0x8] sm:$0xff]  ;;  %v682_v27 = vld [vmem:[#allocation2 + $0x18] sm:$0xff]  ;;  %v678_v28 = vpop.permute.xlu1 %677 }
 0x1bb   : > { %1736 = vmatpush3.xpose.msk.msra.mxu1 %vm548_vm2, %v680_v25  ;;  %v676_v29 = vpop.permute.xlu0 %675 }
 0x1bc   : > { %1745 = vmatprep.subr.mxu1 %v2180_v0 }
 0x1be   : > { %1738 = vmatmul.mubr.msk.f32.vlgmr.msra.gmra.mxu1 %vm548_vm2, %v674_v24  ;;  %v681_v26 = vld [vmem:[#allocation2 + $0x10] sm:$0xff]  ;;  %v1345_v24 = vld [vmem:[#allocation12] sm:$0xff] }
 0x1bf   : > { %1741 = vmatpush3.xpose.msk.msra.mxu0 %vm548_vm2, %v681_v26  ;;  %1746 = vmatpush3.xpose.msk.msra.mxu1 %vm548_vm2, %v682_v27 }
 0x1c0   : > { %1747 = vmatprep.mubr.msk.f32.mxu1 %vm2181_vm0, %v2180_v0  ;;  %1750 = vmatprep.subr.mxu0 %v2180_v0 }
 0x1c1   : > { %1755 = vmatprep.subr.mxu1 %v2180_v0 }
 0x1c2   : > { %1743 = vmatmul.mubr.msk.f32.vlgmr.msra.gmra.mxu0 %vm548_vm2, %v676_v29  ;;  %1748 = vmatmul.mubr.msk.f32.vlgmr.msra.gmra.mxu1 %vm548_vm2, %v678_v28 }
 0x1c3   : > { %1752 = vmatprep.mubr.msk.f32.mxu0 %vm2181_vm0, %v2180_v0  ;;  %1757 = vmatprep.mubr.msk.f32.mxu1 %vm2181_vm0, %v2180_v0 }
 0x20b   : > { %v759_v30 = vpop.f32.mrf.mxu1 }
 0x20c   : > { %v988_v31 = vsel %vm548_vm2, %v759_v30, -inf }
 0x20d   : > { %989 = vmax.xlane.f32.xlu0 %v988_v31  ;;  %v1734_v32 = vpop.f32.mrf.mxu1 }
 0x27e   : > { %v834_v33 = vpop.f32.mrf.mxu1 }
 0x27f   : > { %v991_v34 = vsel %vm548_vm2, %v834_v33, -inf }
 0x280   : > { %992 = vmax.xlane.f32.xlu1 %v991_v34  ;;  %v1739_v35 = vpop.f32.mrf.mxu1 }
 0x282   : > { %v909_v36 = vpop.f32.mrf.mxu0  ;;  %v984_v37 = vpop.f32.mrf.mxu1 }
 0x283   : > { %v994_v38 = vsel %vm548_vm2, %v909_v36, -inf  ;;  %v997_v41 = vsel %vm548_vm2, %v984_v37, -inf }
 0x284   : > { %v1749_v39 = vpop.f32.mrf.mxu1  ;;  %995 = vmax.xlane.f32.xlu0 %v994_v38  ;;  %v1744_v40 = vpop.f32.mrf.mxu0 }
 0x288   : > { %998 = vmax.xlane.f32.xlu0 %v997_v41 }
 0x291   : > { %551 = vrot.lane.b32.xlu1 %v2439_v14, %s2185_s28  ;;  %s2192_s28 = smov [#allocation14]  }
 0x296   : > { %v990_v42 = vpop.xlane.xlu0 %989 }
 0x297   : > { %v1000_v43 = vsub.f32 %v759_v30, %v990_v42 }
 0x299   : > { %v1004_v44 = vmul.f32 1.442695, %v1000_v43 }
 0x29b   : > { %1899 = vpow2.f32 %v1004_v44 }
 0x2a8   : > { %v1900_v45 = vpop.eup %1899 }
 0x2a9   : > { %v1012_v46 = vsel %vm548_vm2, %v1900_v45, 0.0 }
 0x2b5   : > { %1013 = vadd.xlane.f32.xlu1 %v1012_v46 }
 0x309   : > { %v993_v47 = vpop.xlane.xlu1 %992 }
 0x30a   : > { %v1001_v48 = vsub.f32 %v834_v33, %v993_v47 }
 0x30c   : > { %v1006_v49 = vmul.f32 1.442695, %v1001_v48 }
 0x30d   : > { %v552_v50 = vpop.permute.xlu1 %551  ;;  %v996_v51 = vpop.xlane.xlu0 %995 }
 0x30e   : > { %1901 = vpow2.f32 %v1006_v49  ;;  %554 = vst.msk [vmem:[#allocation3] sm:$0xff] %vm548_vm2, %v552_v50  ;;  %v1002_v52 = vsub.f32 %v909_v36, %v996_v51 }
 0x310   : > { %v1008_v53 = vmul.f32 1.442695, %v1002_v52 }
 0x311   : > { %v999_v54 = vpop.xlane.xlu0 %998 }
 0x312   : > { %1903 = vpow2.f32 %v1008_v53  ;;  %v1003_v55 = vsub.f32 %v984_v37, %v999_v54 }
 0x314   : > { %v1010_v56 = vmul.f32 1.442695, %v1003_v55 }
 0x315   : > { %v683_v57 = vld [vmem:[#allocation3] sm:$0xff] }
 0x316   : > { %1905 = vpow2.f32 %v1010_v56  ;;  %1751 = vmatpush3.msra.mxu0 %v683_v57 }
 0x317   : > { %1760 = vmatprep.subr.mxu0 %v2180_v0 }
 0x31b   : > { %v1902_v58 = vpop.eup %1901 }
 0x31c   : > { %v1015_v59 = vsel %vm548_vm2, %v1902_v58, 0.0 }
 0x31d   : > { %1016 = vadd.xlane.f32.xlu0 %v1015_v59 }
 0x31f   : > { %v1904_v60 = vpop.eup %1903 }
 0x320   : > { %v1018_v61 = vsel %vm548_vm2, %v1904_v60, 0.0 }
 0x321   : > { %1019 = vadd.xlane.f32.xlu1 %v1018_v61 }
 0x323   : > { %v1906_v62 = vpop.eup %1905 }
 0x324   : > { %v1021_v63 = vsel %vm548_vm2, %v1906_v62, 0.0 }
 0x325   : > { %1022 = vadd.xlane.f32.xlu0 %v1021_v63 }
 0x332   : > { %570 = vrot.lane.b32.xlu1 %v2439_v14, %s2186_s2  ;;  %s2053_s2 = sshll.u32 %s2192_s28, 4  ;;  %s2054_s2 = int_to_ptr.vmem [resolvable:$false] %s2053_s2 }
 0x333   : > { %p2056_p11 = scmp.lt.s32.totalorder %s2522_s17, %s2054_s2 }
 0x336   : > { %580 = vrot.lane.b32.xlu1 %v2439_v14, %s2187_s16  ;;  %s2055_s16 = scalar_lea.vmem %s2054_s2, 1024 }
 0x337   : > { %p2057_p9 = scmp.lt.s32.totalorder %s2055_s16, %s2049_s25 }
 0x339   : > { %p2058_p13 = por %p2057_p9, %p2056_p11 }
 0x33b   : > { %560 = vrot.lane.b32.xlu0 %v2439_v14, %s2188_s0  ;;  %p2059_p2 = pnand %p2058_p13, %p2052_p10 }
 0x33e   : > { %v1014_v1 = vpop.xlane.xlu1 %1013 }
 0x33f   : > { %1907 = vrcp.f32 %v1014_v1 }
 0x34c   : > { %v1908_v2 = vpop.eup %1907 }
 0x34d   : > { %v1028_v3 = vmul.f32 %v1908_v2, %v1900_v45 }
 0x34f   : > { %1032 = vst.msk [vmem:[%s2484_s20] sm:$0xff] %vm548_vm2, %v1028_v3  ;;  %1753 = vmatmul.mubr.msk.f32.vlgmr.msra.gmra.mxu0 %vm548_vm2, %v1028_v3 }
 0x350   : > { %1762 = vmatprep.mubr.msk.f32.mxu0 %vm2181_vm0, %v2180_v0 }
 0x3a6   : > { %v1017_v4 = vpop.xlane.xlu0 %1016 }
 0x3a7   : > { %1909 = vrcp.f32 %v1017_v4 }
 0x3aa   : > { %v1020_v5 = vpop.xlane.xlu1 %1019 }
 0x3ab   : > { %1911 = vrcp.f32 %v1020_v5 }
 0x3ae   : > { %v571_v6 = vpop.permute.xlu1 %570  ;;  %v1023_v7 = vpop.xlane.xlu0 %1022 }
 0x3af   : > { %574 = vst.msk [vmem:[#allocation3 + $0x10] sm:$0xff] %vm548_vm2, %v571_v6  ;;  %1913 = vrcp.f32 %v1023_v7 }
 0x3b2   : > { %v581_v8 = vpop.permute.xlu1 %580  ;;  %v561_v9 = vpop.permute.xlu0 %560 }
 0x3b3   : > { %584 = vst.msk [vmem:[#allocation3 + $0x18] sm:$0xff] %vm548_vm2, %v581_v8  ;;  %564 = vst.msk [vmem:[#allocation3 + $0x8] sm:$0xff] %vm548_vm2, %v561_v9 }
 0x3b4   : > { %v1910_v10 = vpop.eup %1909 }
 0x3b5   : > { %v1029_v11 = vmul.f32 %v1910_v10, %v1902_v58 }
 0x3b6   : > { %v685_v12 = vld [vmem:[#allocation3 + $0x10] sm:$0xff] }
 0x3b7   : > { %1761 = vmatpush3.msra.mxu0 %v685_v12  ;;  %1033 = vst.msk [vmem:[%s2484_s20 + $0x8] sm:$0xff] %vm548_vm2, %v1029_v11 }
 0x3b8   : > { %v1912_v13 = vpop.eup %1911  ;;  %1770 = vmatprep.subr.mxu0 %v2180_v0 }
 0x3b9   : > { %v1030_v14 = vmul.f32 %v1912_v13, %v1904_v60 }
 0x3ba   : > { %v684_v15 = vld [vmem:[#allocation3 + $0x8] sm:$0xff]  ;;  %v686_v17 = vld [vmem:[#allocation3 + $0x18] sm:$0xff] }
 0x3bb   : > { %1756 = vmatpush3.msra.mxu1 %v684_v15  ;;  %1034 = vst.msk [vmem:[%s2484_s20 + $0x10] sm:$0xff] %vm548_vm2, %v1030_v14  ;;  %1763 = vmatmul.mubr.msk.f32.vlgmr.msra.gmra.mxu0 %vm548_vm2, %v1030_v14 }
 0x3bc   : > { %v1914_v16 = vpop.eup %1913  ;;  %1758 = vmatmul.mubr.msk.f32.vlgmr.msra.gmra.mxu1 %vm548_vm2, %v1029_v11  ;;  %1765 = vmatprep.subr.mxu1 %v2180_v0 }
 0x3bd   : > { %1766 = vmatpush3.msra.mxu1 %v686_v17  ;;  %1767 = vmatprep.mubr.msk.f32.mxu1 %vm2181_vm0, %v2180_v0  ;;  %v1031_v18 = vmul.f32 %v1914_v16, %v1906_v62 }
 0x3be   : > { %1778 = vmatprep.mubr.msk.f32.mxu0 %vm2181_vm0, %v2180_v0  ;;  %1771 = vmatpush3.msra.mxu0 %v1348_v19 }
 0x3bf   : > { %1035 = vst.msk [vmem:[%s2484_s20 + $0x18] sm:$0xff] %vm548_vm2, %v1031_v18  ;;  %1772 = vmatprep.subr.mxu0 %v2180_v0 }
 0x3c0   : > { %1768 = vmatmul.mubr.msk.f32.vlgmr.msra.gmra.mxu1 %vm548_vm2, %v1031_v18  ;;  %1773 = vmatpush3.msra.mxu0 %v1347_v22 }
 0x3c1   : > { %1774 = vmatprep.subr.mxu0 %v2180_v0 }
 0x3c2   : > { %1775 = vmatpush3.msra.mxu0 %v1346_v23 }
 0x3c3   : > { %1776 = vmatprep.subr.mxu0 %v2180_v0 }
 0x3c4   : > { %1777 = vmatpush3.msra.mxu0 %v1345_v24 }
 0x40f   : > { %v1105_v20 = vpop.f32.mrf.mxu0 }
 0x411   : > { %v1754_v21 = vpop.f32.mrf.mxu0 }
 0x47b   : > { %v1251_v25 = vpop.f32.mrf.mxu0 }
 0x47c   : > { %v1178_v26 = vpop.f32.mrf.mxu1  ;;  %1333 = vrot.lane.b32.xlu1 %v1251_v25, %s2189_s6 }
 0x47d   : > { %1329 = vrot.lane.b32.xlu0 %v1178_v26, %s2190_s19  ;;  %v1764_v27 = vpop.f32.mrf.mxu0 }
 0x47e   : > { %v1759_v28 = vpop.f32.mrf.mxu1 }
 0x480   : > { %v1324_v29 = vpop.f32.mrf.mxu1 }
 0x481   : > { %1337 = vrot.lane.b32.xlu0 %v1324_v29, %s2191_s27 }
 0x482   : > { %v1769_v30 = vpop.f32.mrf.mxu1 }
 0x4ee   : > { %v1334_v32 = vpop.permute.xlu1 %1333 }
 0x4ef   : > { %v1330_v31 = vpop.permute.xlu0 %1329 }
 0x4f0   : > { %v1340_v0 = vsel %vm548_vm2, %v1105_v20, %v1330_v31 }
 0x4f1   : > { %v1342_v34 = vsel %vm1341_vm3, %v1340_v0, %v1334_v32 }
 0x4f3   : > { %v1338_v33 = vpop.permute.xlu0 %1337 }
 0x4f4   : > { %v1344_v35 = vsel %vm1343_vm4, %v1342_v34, %v1338_v33 }
 0x4f5   : > { %1779 = vmatmul.mubr.msk.f32.vlgmr.msra.gmra.mxu0 %vm474_vm1, %v1344_v35 }
 0x4f6   : > { %2062 = shalt.err (!%p2059_p2)
}
 0x4f7   : > { %s2063_s0 = scalar_lea.hbm %s2520_s30, 512  ;;  %s2067_s6 = scalar_lea.hbm %s2608_s9, 1024 }
 0x4f8   : > { %p2064_p4 = scmp.ne.s32.totalorder %s2520_s30, %s2063_s0  ;;  %p2068_p7 = scmp.lt.s32.totalorder %s2520_s30, %s2608_s9 }
 0x4f9   : > { %p2069_p6 = scmp.lt.s32.totalorder %s2067_s6, %s2063_s0 }
 0x4fa   : > { %p2065_p1 = pnand %p2064_p4, %p2341_p5 }
 0x4fb   : > { %p2070_p12 = por %p2069_p6, %p2068_p7 }
 0x4fc   : > { %p2066_p8 = pneg %p2065_p1 }
 0x4fe   : > { %p2071_p0 = pnand %p2070_p12, %p2066_p8 }
 0x500   : > { %2074 = shalt.err (!%p2071_p0)
}
 0x501   : > { %s2193_s24 = smov 128   ;;  %v1667_v36 = vld [vmem:[%s2606_s7] ss:$0 sm:$0xff]  ;;  %s1671_s28 = sshll.u32 %s2163_s12, 7 }
 0x502   : > { %1798 = dma.vmem_to_hbm [thread:$0]  (%p2341_p5), %s2522_s17, 512, %s2520_s30, %s1436_s18, %s2193_s24, %s2193_s24, %s2190_s19  }
 0x503   : > { %s450_s2 = scalar_lea.vmem [#allocation13], %s2389_s23  ;;  %s2556_s20 = scalar_lea.hbm %s2607_s8, %s1671_s28 }
 0x504   : > { %s1450_s16 = sshll.u32 %s450_s2, 4  ;;  %s1431_s6 = scalar_lea.sflag [#allocation6], %s2386_s4  ;;  %s1451_s16 = int_to_ptr.vmem [resolvable:$true] %s1450_s16 }
 0x505   : > { %s2075_s19 = scalar_lea.vmem %s1451_s16, 128  ;;  %s2194_s12 = smov [#allocation13]  }
 0x506   : > { %p2076_p3 = scmp.ne.s32.totalorder %s1451_s16, %s2075_s19  ;;  %s2079_s23 = sshll.u32 %s2194_s12, 4  ;;  %s2080_s23 = int_to_ptr.vmem [resolvable:$false] %s2079_s23 }
 0x507   : > { %s2081_s17 = scalar_lea.vmem %s2080_s23, 256  ;;  %p2082_p9 = scmp.lt.s32.totalorder %s1451_s16, %s2080_s23 }
 0x508   : > { %p2077_p10 = pnand %p2076_p3, %p2341_p5  ;;  %p2083_p13 = scmp.lt.s32.totalorder %s2081_s17, %s2075_s19 }
 0x50a   : > { %p2078_p11 = pneg %p2077_p10  ;;  %p2084_p2 = por %p2083_p13, %p2082_p9 }
 0x50c   : > { %p2085_p4 = pnand %p2084_p2, %p2078_p11 }
 0x5b5   : > { %v1425_v37 = vpop.f32.mrf.mxu0 }
 0x5b6   : > { %v1426_v38 = vadd.f32 %v1667_v36, %v1425_v37 }
 0x5b7   : > { %v1780_v39 = vpop.f32.mrf.mxu0 }
 0x5b8   : > { %1429 = vst.msk [vmem:[%s450_s2] sm:$0xff] %vm474_vm1, %v1426_v38 }
 0x5b9   : > { %2088 = shalt.err (!%p2085_p4)
}
 0x5ba   : > { %s2089_s30 = scalar_lea.hbm %s2556_s20, 128  ;;  %s2093_s27 = scalar_lea.hbm %s2607_s8, 256 }
 0x5bb   : > { %p2090_p1 = scmp.ne.s32.totalorder %s2556_s20, %s2089_s30  ;;  %p2094_p6 = scmp.lt.s32.totalorder %s2556_s20, %s2607_s8 }
 0x5bc   : > { %p2095_p12 = scmp.lt.s32.totalorder %s2093_s27, %s2089_s30 }
 0x5bd   : > { %p2091_p8 = pnand %p2090_p1, %p2341_p5 }
 0x5be   : > { %p2096_p0 = por %p2095_p12, %p2094_p6 }
 0x5bf   : > { %p2092_p7 = pneg %p2091_p8 }
 0x5c1   : > { %p2097_p3 = pnand %p2096_p0, %p2092_p7 }
 0x5c3   : > { %2100 = shalt.err (!%p2097_p3)
}
 0x5c4   : > { %1797 = dma.vmem_to_hbm [thread:$0]  (%p2341_p5), %s1451_s16, 128, %s2556_s20, %s1431_s6  }
 0x5c5 PF: > { %s2637_s21 = sld [smem:[#allocation22_spill]]  ;;  %p2640_p11 = scmp.ge.s32.totalorder %s2171_s14, 2 }
 0x5c6   : > { %s2638_s25 = sld [smem:[#allocation23_spill]] }
 0x5cb   : > { %s1479_s28 = sand.u32 1, %s2637_s21  }
 0x5cc   : > { %p2639_p10 = scmp.ne.s32.totalorder %s2638_s25, 0  ;;  %s1480_s2 = scalar_lea.sflag [#allocation6], %s1479_s28 }
 0x5ce   : > { %p1819_p9 = pnand %p2640_p11, %p2639_p10 }
 0x5d0   : > { %p1820_p13 = pneg %p1819_p9 }
 0x5d2   : > { %2142 = dma.done.wait (%p1820_p13), %s1480_s2, 128  }
 0x5d3   : > { %2144 = vsyncadd (%p1820_p13), %s1480_s2, 4294967168  ;;  %s1489_s0 = scalar_lea.sflag [#allocation15], %s1479_s28 }
 0x5d4   : > { %2146 = dma.done.wait (%p1820_p13), %s1489_s0, 512  }
 0x5d5   : > { %2148 = vsyncadd (%p1820_p13), %s1489_s0, 4294966784  ;;  %s33_s14 = sadd.s32 1, %s2171_s14   ;;  %s2641_s22 = sld [smem:[#allocation24_spill]] }
 0x5d6   : > { %p30_p2 = scmp.ge.s32.totalorder %s33_s14, 4   ;;  %s2642_s30 = smov %s2155_s10 }
 0x5d7   : > { %s2643_s10 = smov %s2159_s11  ;;  %s2644_s11 = smov %s2353_s29 }
 0x5d8   : > { %s2645_s12 = smov %s2167_s13  ;;  %32 = sbr.rel (!%p30_p2) target bundleno = 16 (0x10), region = 149 }
 0x5db   : > { %s2646_s13 = smov %s2641_s22 }
 0x5dd   :  { %1494 = vsyncpa [#allocation5], 1 }
 0x5de   :  { %1496 = vsyncpa [#allocation5 + $0x1], 1 }
 0x5df   :  { %1497 = vsyncpa [#allocation8], 1 }
 0x5e0   :  { %1499 = vsyncpa [#allocation8 + $0x1], 1 }
 0x5e1   :  { %1500 = vsyncpa [#allocation11], 1 }
 0x5e2   :  { %1501 = vsyncpa [#allocation6], 1 }
 0x5e3   :  { %1503 = vsyncpa [#allocation6 + $0x1], 1 }
 0x5e4   :  { %1504 = vsyncpa [#allocation15], 1 }
 0x5e5   :  { %1506 = vsyncpa [#allocation15 + $0x1], 1 }

</bundles_post_ra>
